<compile_context>
chip_gen: v7x
topology: tpu7x:2x2x1
jax: 0.10.0
libtpu: 0.0.40
codegen_flags: <defaults>
</compile_context>

<pallas_src>
import jax
import jax.numpy as jnp
from jax.experimental import pallas as pl
from jax.experimental.pallas import tpu as pltpu


def pos_choser_kernel(leaf_t_ref, shared_t_ref, w1n_t_ref, w2_ref, b2_ref, scores_ref):
    """One tree per invocation, feature-major layout (leaf axis on lanes).

    leaf_t_ref   : (1, node_dim, L)     leaf GCN hidden states, transposed
    shared_t_ref : (1, node_dim, 1)     hoisted word/graph/bias part of Linear1
    w1n_t_ref    : (node_dim, node_dim) node-hidden slice of W1 (transposed)
    w2_ref       : (node_dim, 1)        W2 as a column
    b2_ref       : (1, 1)
    scores_ref   : (1, 1, L)            softmax over this tree's leaves
    """
    node_t = leaf_t_ref[0]                                             # (node_dim, L)

    # score_cal[0]: Linear(inp_dim -> node_dim). Only the leaf-dependent slice runs
    # on the MXU; the word/graph/bias contribution arrives precomputed ("shared").
    h_t = (jnp.dot(w1n_t_ref[...], node_t, preferred_element_type=jnp.float32)
           + shared_t_ref[0])                                          # (node_dim, L)
    # score_cal[1]: ReLU.  score_cal[2]: Dropout -> identity at inference time.
    h_t = jnp.maximum(h_t, 0.0)
    # score_cal[3]: Linear(node_dim -> 1) as VPU multiply + sublane reduce
    # (an N=1 MXU matmul would waste the systolic array and its result FIFO).
    s = jnp.sum(h_t * w2_ref[...], axis=0, keepdims=True) + b2_ref[...]  # (1, L)

    # scores.view(-1); F.softmax over the leaf (lane) axis.
    # TODO(synk): if L were ever padded / variable per tree, padded lanes would
    # need masking to -inf before these reductions.
    m = jnp.max(s, axis=-1, keepdims=True)
    e = jnp.exp(s - m)
    denom = jnp.sum(e, axis=-1, keepdims=True)
    scores_ref[0] = e * pl.reciprocal(denom, approx=False)


def pos_choser_scores(chosen_word_emb, graph_hidden, leaf_node_embs, W1, b1, W2, b2):
    """softmax(score_cal(cat([word, node, graph], 1)))[leaves] for a batch of trees.

    chosen_word_emb : (B, emb_dim)      per-tree chosen word embedding
    graph_hidden    : (B, node_dim)     per-tree graph aggregation vector
    leaf_node_embs  : (B, L, node_dim)  per-tree GCN hidden states of the leaf rows
    W1, b1, W2, b2  : score_cal parameters (shared across the batch)
    Returns (B, L) softmax scores.
    """
    B, L, node_dim = leaf_node_embs.shape
    emb_dim = chosen_word_emb.shape[-1]

    # Split W1.T by the concat layout cat([word, node, graph], dim=1) and hoist the
    # leaf-independent contribution (word + graph slices + bias) out of the kernel.
    W1T = W1.T                                          # (inp_dim, node_dim)
    w1w = W1T[:emb_dim]                                 # (emb_dim, node_dim)
    w1n = W1T[emb_dim:emb_dim + node_dim]               # (node_dim, node_dim)
    w1g = W1T[emb_dim + node_dim:]                      # (node_dim, node_dim)
    shared = chosen_word_emb @ w1w + graph_hidden @ w1g + b1            # (B, node_dim)

    # Feature-major layout: leaf axis on lanes (layout plumbing only, no compute).
    leaf_t = jnp.transpose(leaf_node_embs, (0, 2, 1)).astype(jnp.float32)  # (B, node_dim, L)
    shared_t = shared[:, :, None].astype(jnp.float32)                      # (B, node_dim, 1)
    w1n_t = jnp.asarray(w1n.T, jnp.float32)                                # (node_dim, node_dim)
    w2_col = jnp.asarray(W2.reshape(-1, 1), jnp.float32)                   # (node_dim, 1)
    b2_2d = jnp.asarray(b2, jnp.float32).reshape(1, 1)                     # (1, 1)

    out_shape = jax.ShapeDtypeStruct((B, 1, L), jnp.float32)

    if B == 1:
        # Single tree: no grid at all (a 1-point grid only adds pipeline
        # bookkeeping and double-buffering for zero benefit).
        vmem = pl.BlockSpec(memory_space=pltpu.MemorySpace.VMEM)
        scores = pl.pallas_call(
            pos_choser_kernel,
            out_shape=out_shape,
            in_specs=[vmem] * 5,
            out_specs=vmem,
        )(leaf_t, shared_t, w1n_t, w2_col, b2_2d)
    else:
        # Batched trees / decoding steps: one grid step per tree, "parallel" so a
        # second TensorCore (v7x megacore) can pick up work; weights keep a constant
        # block index so they are not re-fetched per step.
        scores = pl.pallas_call(
            pos_choser_kernel,
            out_shape=out_shape,
            grid=(B,),
            in_specs=[
                pl.BlockSpec((1, node_dim, L), lambda b: (b, 0, 0)),
                pl.BlockSpec((1, node_dim, 1), lambda b: (b, 0, 0)),
                pl.BlockSpec((node_dim, node_dim), lambda b: (0, 0)),
                pl.BlockSpec((node_dim, 1), lambda b: (0, 0)),
                pl.BlockSpec((1, 1), lambda b: (0, 0)),
            ],
            out_specs=pl.BlockSpec((1, 1, L), lambda b: (b, 0, 0)),
            compiler_params=pltpu.CompilerParams(
                dimension_semantics=("parallel",)),
        )(leaf_t, shared_t, w1n_t, w2_col, b2_2d)

    return scores.reshape(B, L)


if __name__ == "__main__":
    node_dim = 32
    emb_dim = 32
    inp_dim = 2 * node_dim + emb_dim
    num_nodes = 16
    num_leaves = 8
    batch = 3          # several trees / decoding steps batched into one pallas_call

    key = jax.random.PRNGKey(0)
    k_node, k_word, k_w1, k_b1, k_w2, k_b2 = jax.random.split(key, 6)

    # Glue stand-ins for the un-translatable graph machinery:
    #   node_embs  ~ the_graph.node_embs after the_gcn()
    #   graph_hid  ~ the_graph.the_aggr()
    #   word_emb   ~ sentence_encoder(word_idx)
    # TODO(synk): tree2graph / GCN message passing / LSTM sentence encoder are
    # dynamic-data-structure code with no Pallas equivalent; synthesized here.
    node_embs = jax.random.normal(k_node, (batch, num_nodes, node_dim), jnp.float32)
    graph_hidden = jnp.mean(node_embs, axis=1)                          # (B, node_dim)
    chosen_word_emb = jax.random.normal(k_word, (batch, emb_dim), jnp.float32)

    # Leaf gather (cur_tree.leaves() -> indices -> node_hidden[leave_inds]) stays in glue.
    leaf_inds = jnp.array([0, 2, 3, 5, 7, 9, 11, 15], dtype=jnp.int32)
    leaf_node_embs = node_embs[:, leaf_inds]                            # (B, L, node_dim)

    # score_cal parameters (deterministic xavier-like init).
    def xavier(k, shape):
        fan_in, fan_out = shape[1], shape[0]
        limit = jnp.sqrt(6.0 / (fan_in + fan_out))
        return jax.random.uniform(k, shape, jnp.float32, -limit, limit)

    W1 = xavier(k_w1, (node_dim, inp_dim))       # nn.Linear(inp_dim, node_dim).weight
    b1 = jax.random.normal(k_b1, (node_dim,), jnp.float32) * 0.01
    W2 = xavier(k_w2, (1, node_dim))             # nn.Linear(node_dim, 1).weight
    b2 = jax.random.normal(k_b2, (1,), jnp.float32) * 0.01

    # Batched call (B trees in one pallas_call, grid axis "parallel").
    scores_b = pos_choser_scores(chosen_word_emb, graph_hidden, leaf_node_embs,
                                 W1, b1, W2, b2)
    # Single-tree call (no grid at all).
    scores_1 = pos_choser_scores(chosen_word_emb[:1], graph_hidden[:1],
                                 leaf_node_embs[:1], W1, b1, W2, b2)
    scores_b, scores_1 = jax.block_until_ready((scores_b, scores_1))

    # Pure-JAX reference of the PyTorch forward semantics (eval mode).
    word_rep = jnp.broadcast_to(chosen_word_emb[:, None, :],
                                (batch, num_leaves, emb_dim))
    graph_rep = jnp.broadcast_to(graph_hidden[:, None, :],
                                 (batch, num_leaves, node_dim))
    feats = jnp.concatenate([word_rep, leaf_node_embs, graph_rep], axis=2)  # (B, L, inp)
    ref = jnp.maximum(feats @ W1.T + b1, 0.0) @ W2.T + b2                   # (B, L, 1)
    ref = jax.nn.softmax(ref[..., 0], axis=-1)                              # (B, L)

    assert scores_b.shape == (batch, num_leaves)
    assert jnp.allclose(jnp.sum(scores_b, axis=-1), 1.0, atol=1e-5)
    assert jnp.allclose(scores_b, ref, atol=2e-5, rtol=1e-5)
    assert scores_1.shape == (1, num_leaves)
    assert jnp.allclose(scores_1, ref[:1], atol=2e-5, rtol=1e-5)
    print("KERNEL_OK")
</pallas_src>

<mosaic_0001>
module attributes {stable_mosaic.version = 11 : i64} {
  func.func @pos_choser_kernel(%arg0: i32, %arg1: memref<1x32x8xf32, #tpu.memory_space<vmem>>, %arg2: memref<1x32x1xf32, #tpu.memory_space<vmem>>, %arg3: memref<32x32xf32, #tpu.memory_space<vmem>>, %arg4: memref<32x1xf32, #tpu.memory_space<vmem>>, %arg5: memref<1x1xf32, #tpu.memory_space<vmem>>, %arg6: memref<1x1x8xf32, #tpu.memory_space<vmem>>) attributes {dimension_semantics = [#tpu.dimension_semantics<parallel>], iteration_bounds = array<i64: 3>, scalar_prefetch = 0 : i64, scratch_operands = 0 : i64, tpu.core_type = #tpu.core_type<tc>, window_params = [{transform_indices = @transform_0, window_bounds = array<i64: 1, 32, 8>}, {transform_indices = @transform_1, window_bounds = array<i64: 1, 32, 1>}, {pipeline_mode = #tpu.pipeline_mode<synchronous>, transform_indices = @transform_2, window_bounds = array<i64: 32, 32>}, {pipeline_mode = #tpu.pipeline_mode<synchronous>, transform_indices = @transform_3, window_bounds = array<i64: 32, 1>}, {pipeline_mode = #tpu.pipeline_mode<synchronous>, transform_indices = @transform_4, window_bounds = array<i64: 1, 1>}, {transform_indices = @transform_5, window_bounds = array<i64: 1, 1, 8>}]} {
    %c0 = arith.constant 0 : index
    %c0_0 = arith.constant 0 : index
    %c0_1 = arith.constant 0 : index
    %0 = vector.load %arg1[%c0, %c0_0, %c0_1] : memref<1x32x8xf32, #tpu.memory_space<vmem>>, vector<1x32x8xf32>
    %1 = vector.shape_cast %0 : vector<1x32x8xf32> to vector<32x8xf32>
    %c0_2 = arith.constant 0 : index
    %c0_3 = arith.constant 0 : index
    %2 = vector.load %arg3[%c0_2, %c0_3] : memref<32x32xf32, #tpu.memory_space<vmem>>, vector<32x32xf32>
    %cst = arith.constant dense<0.000000e+00> : vector<32x8xf32>
    %3 = tpu.matmul %2, %1, %cst {dimension_numbers = #tpu.dot_dimension_numbers<[1], [0], [0], [1], [0, 0, 1, 1], [], []>} : vector<32x32xf32>, vector<32x8xf32>, vector<32x8xf32> -> vector<32x8xf32>
    %c0_4 = arith.constant 0 : index
    %c0_5 = arith.constant 0 : index
    %c0_6 = arith.constant 0 : index
    %4 = vector.load %arg2[%c0_4, %c0_5, %c0_6] : memref<1x32x1xf32, #tpu.memory_space<vmem>>, vector<1x32x1xf32>
    %5 = vector.shape_cast %4 : vector<1x32x1xf32> to vector<32x1xf32>
    %6 = vector.broadcast %5 : vector<32x1xf32> to vector<32x8xf32>
    %7 = arith.addf %3, %6 : vector<32x8xf32>
    %cst_7 = arith.constant 0.000000e+00 : f32
    %8 = vector.broadcast %cst_7 : f32 to vector<32x8xf32>
    %9 = arith.maximumf %7, %8 : vector<32x8xf32>
    %c0_8 = arith.constant 0 : index
    %c0_9 = arith.constant 0 : index
    %10 = vector.load %arg4[%c0_8, %c0_9] : memref<32x1xf32, #tpu.memory_space<vmem>>, vector<32x1xf32>
    %11 = vector.broadcast %10 : vector<32x1xf32> to vector<32x8xf32>
    %12 = arith.mulf %9, %11 : vector<32x8xf32>
    %cst_10 = arith.constant dense<0.000000e+00> : vector<8xf32>
    %13 = vector.multi_reduction <add>, %12, %cst_10 [0] : vector<32x8xf32> to vector<8xf32>
    %14 = vector.shape_cast %13 : vector<8xf32> to vector<1x8xf32>
    %c0_11 = arith.constant 0 : index
    %c0_12 = arith.constant 0 : index
    %15 = vector.load %arg5[%c0_11, %c0_12] : memref<1x1xf32, #tpu.memory_space<vmem>>, vector<1x1xf32>
    %16 = vector.broadcast %15 : vector<1x1xf32> to vector<1x8xf32>
    %17 = arith.addf %14, %16 : vector<1x8xf32>
    %cst_13 = arith.constant dense<0xFF800000> : vector<1xf32>
    %18 = vector.multi_reduction <maximumf>, %17, %cst_13 [1] : vector<1x8xf32> to vector<1xf32>
    %19 = vector.shape_cast %18 : vector<1xf32> to vector<1x1xf32>
    %20 = vector.broadcast %19 : vector<1x1xf32> to vector<1x8xf32>
    %21 = arith.subf %17, %20 : vector<1x8xf32>
    %22 = math.exp %21 : vector<1x8xf32>
    %cst_14 = arith.constant dense<0.000000e+00> : vector<1xf32>
    %23 = vector.multi_reduction <add>, %22, %cst_14 [1] : vector<1x8xf32> to vector<1xf32>
    %24 = vector.shape_cast %23 : vector<1xf32> to vector<1x1xf32>
    %25 = tpu.reciprocal %24 : vector<1x1xf32> -> vector<1x1xf32>
    %26 = vector.broadcast %25 : vector<1x1xf32> to vector<1x8xf32>
    %27 = arith.mulf %22, %26 : vector<1x8xf32>
    %c0_15 = arith.constant 0 : index
    %c0_16 = arith.constant 0 : index
    %c0_17 = arith.constant 0 : index
    %28 = vector.load %arg6[%c0_15, %c0_16, %c0_17] : memref<1x1x8xf32, #tpu.memory_space<vmem>>, vector<1x1x8xf32>
    %29 = vector.shape_cast %28 : vector<1x1x8xf32> to vector<1x8xf32>
    %30 = vector.shape_cast %27 : vector<1x8xf32> to vector<1x1x8xf32>
    tpu.vector_store %arg6[%c0_15, %c0_16, %c0_17], %30 {strides = array<i32>} : memref<1x1x8xf32, #tpu.memory_space<vmem>>, vector<1x1x8xf32>,
    return
  }
  func.func @transform_0(%arg0: i32) -> (i32, i32, i32) {
    %c0_i32 = arith.constant 0 : i32
    %c0_i32_0 = arith.constant 0 : i32
    %c0_i32_1 = arith.constant 0 : i32
    return %arg0, %c0_i32, %c0_i32_0 : i32, i32, i32
  }
  func.func @transform_1(%arg0: i32) -> (i32, i32, i32) {
    %c0_i32 = arith.constant 0 : i32
    %c0_i32_0 = arith.constant 0 : i32
    %c0_i32_1 = arith.constant 0 : i32
    return %arg0, %c0_i32, %c0_i32_0 : i32, i32, i32
  }
  func.func @transform_2(%arg0: i32) -> (i32, i32) {
    %c0_i32 = arith.constant 0 : i32
    %c0_i32_0 = arith.constant 0 : i32
    %c0_i32_1 = arith.constant 0 : i32
    return %c0_i32, %c0_i32_0 : i32, i32
  }
  func.func @transform_3(%arg0: i32) -> (i32, i32) {
    %c0_i32 = arith.constant 0 : i32
    %c0_i32_0 = arith.constant 0 : i32
    %c0_i32_1 = arith.constant 0 : i32
    return %c0_i32, %c0_i32_0 : i32, i32
  }
  func.func @transform_4(%arg0: i32) -> (i32, i32) {
    %c0_i32 = arith.constant 0 : i32
    %c0_i32_0 = arith.constant 0 : i32
    %c0_i32_1 = arith.constant 0 : i32
    return %c0_i32, %c0_i32_0 : i32, i32
  }
  func.func @transform_5(%arg0: i32) -> (i32, i32, i32) {
    %c0_i32 = arith.constant 0 : i32
    %c0_i32_0 = arith.constant 0 : i32
    %c0_i32_1 = arith.constant 0 : i32
    return %arg0, %c0_i32, %c0_i32_0 : i32, i32, i32
  }
}

</mosaic_0001>

<bundles_post_ra>
// kernel: tpu_custom_call.1
= control target key start
LH: loop header
LB: loop body
LE: loop exit
PB: predicated region body
PF: predicated region fallthrough
CT: control target
= control target key end

     0   :  { %s857_s0 = inlined_call_operand.vmem [shape: f32[3,32,8], index: 0, kind: input, shape index: {}]   ;;  %s858_s1 = inlined_call_operand.vmem [shape: f32[3,32,1], index: 1, kind: input, shape index: {}]   ;;  %s859_s2 = inlined_call_operand.vmem [shape: f32[32,32], index: 2, kind: input, shape index: {}]   ;;  %s860_s3 = inlined_call_operand.vmem [shape: f32[32,1], index: 3, kind: input, shape index: {}]   ;;  %s861_s4 = inlined_call_operand.<no memory space> [shape: f32[1,1], index: 4, kind: input, shape index: {}]   ;;  %s862_s5 = inlined_call_operand.hbm [shape: f32[3,1,8], index: 5, kind: output, shape index: {}]  }
   0x1   :  { %v10_v0 = vstv %s861_s4 }
   0x2   :  { %11 = vst [vmem:[#allocation2] sm:$0x1] %v10_v0 }
   0x3   :  { %12 = vsyncpa [#allocation4], 0 }
   0x4   :  { %14 = vsyncpa [#allocation4 + $0x1], 0  ;;  %s720_s20 = smov 0   ;;  %s722_s21 = smov 0  }
   0x5   :  { %s724_s22 = smov 0   ;;  %s726_s23 = smov 0  }
   0x6 LB: > { %s741_s4 = sadd.s32 4294967295, %s683_s23   ;;  %s524_s24 = sadd.s32 4294967294, %s683_s23   ;;  %s683_s23 = sphi %s726_s23, %s868_s23   ;;  %s679_s22 = sphi %s724_s22, %s867_s22   ;;  %s675_s21 = sphi %s722_s21, %s866_s21   ;;  %s671_s20 = sphi %s720_s20, %s865_s20  }
   0x7   : > { %s745_s25 = sadd.s32 1, %s683_s23   ;;  %s142_s26 = sadd.s32 1, %s679_s22 }
   0x8   : > { %s139_s27 = ssub.s32 %s683_s23, %s745_s25  ;;  %p152_p0 = scmp.ne.s32.totalorder %s679_s22, %s675_s21 }
   0x9   : > { %p140_p1 = scmp.eq.s32.totalorder %s139_s27, 0  ;;  %p153_p2 = scmp.eq.s32.totalorder %s741_s4, 2 }
   0xa   : > { %p158_p3 = scmp.ne.s32.totalorder %s675_s21, %s671_s20  ;;  %p159_p4 = scmp.eq.s32.totalorder %s524_s24, 2 }
   0xb   : > { %s756_s28 = scalar_select %p140_p1, %s679_s22, %s142_s26  }
   0xc   : > { %p758_p5 = por %p153_p2, %p152_p0  ;;  %p762_p6 = por %p159_p4, %p158_p3 }
   0xd   : > { %p527_p7 = scmp.ge.s32.totalorder %s683_s23, 1  ;;  %p202_p8 = scmp.lt.s32.totalorder %s683_s23, 4 }
   0xf   : > { %p203_p9 = pnand %p527_p7, %p202_p8 }
  0x10   : > { %p234_p10 = scmp.lt.s32.totalorder (!%p203_p9), %s741_s4, 2  ;;  %v248_v1 = vld [vmem:[%s859_s2] sm:$0xff] (!%p203_p9)  ;;  %vm276_vm0 = vcmask (!%p203_p9), 261120   ;;  %v250_v2 = vld [vmem:[%s859_s2 + $0x10] sm:$0xff] (!%p203_p9)  ;;  %v685_v3 = vmov (!%p203_p9), 0   ;;  %v249_v15 = vld [vmem:[%s859_s2 + $0x8] sm:$0xff] (!%p203_p9)  ;;  %v426_v51 = vlaneseq (!%p203_p9) }
  0x11   : > { %206 = sbr.rel (%p203_p9) target bundleno = 607 (0x25f), region = 40  ;;  %557 = vmatprep.mubr.msk.f32.mxu0 (!%p203_p9), %vm276_vm0, %v248_v1  ;;  %560 = vmatprep.mubr.msk.f32.mxu1 (!%p203_p9), %vm276_vm0, %v250_v2  ;;  %v378_v13 = vld [vmem:[%s860_s3] sm:$0xff] (!%p203_p9)  ;;  %v251_v16 = vld [vmem:[%s859_s2 + $0x18] sm:$0xff] (!%p203_p9)  ;;  %v380_v17 = vld [vmem:[%s860_s3 + $0x10] sm:$0xff] (!%p203_p9)  ;;  %vm406_vm1 = vcmask (!%p203_p9), 64512   ;;  %s232_s13 = sand.u32 (!%p203_p9), 1, %s675_s21  }
  0x12   : > { %615 = vset.pattern.permute.xlu0 (!%p203_p9), %v685_v3  ;;  %616 = vset.pattern.permute.xlu1 (!%p203_p9), %v685_v3  ;;  %v379_v18 = vld [vmem:[%s860_s3 + $0x8] sm:$0xff] (!%p203_p9)  ;;  %v420_v19 = vld [vmem:[#allocation2] sm:$0x1] (!%p203_p9)  ;;  %v381_v20 = vld [vmem:[%s860_s3 + $0x18] sm:$0xff] (!%p203_p9)  ;;  %v427_v54 = vshrl.u32 (!%p203_p9), %v426_v51, 7  ;;  %s233_s15 = scalar_lea.vmem (!%p203_p9), [#allocation3], %s232_s13 }
  0x13   : > { %s457_s16 = sshll.u32 (!%p203_p9), %s233_s15, 4  ;;  %vm442_vm2 = vcmask (!%p203_p9), 57344   ;;  %s445_s24 = scalar_lea.sflag (!%p203_p9), [#allocation4], %s232_s13  ;;  %s817_s16 = int_to_ptr.vmem [resolvable:$true] %s457_s16 }
  0x14   : > { %v428_v57 = vsub.s32 (!%p203_p9), 0, %v427_v54  ;;  %s621_s26 = scalar_lea.vmem (!%p203_p9), %s817_s16, 16 }
  0x15   : > { %p622_p11 = scmp.ne.s32.totalorder (!%p203_p9), %s817_s16, %s621_s26 }
  0x17   : > { %p623_p12 = pnand (!%p203_p9), %p622_p11, %p758_p5 }
  0x18   : > { %s235_s10 = scalar_select %p234_p10, %s741_s4, 2 }
  0x19   : > { %p624_p13 = pneg %p623_p12 }
  0x1a   : > { %s539_s11 = sshll.u32 %s235_s10, 5 }
  0x1b   : > { %s238_s14 = scalar_lea.vmem %s857_s0, %s539_s11  ;;  %s243_s17 = scalar_lea.vmem %s858_s1, %s539_s11 }
  0x1c   : > { %v244_v4 = vld [vmem:[%s238_s14] sm:$0xff]  ;;  %v245_v5 = vld [vmem:[%s238_s14 + $0x8] sm:$0xff]  ;;  %v246_v6 = vld [vmem:[%s238_s14 + $0x10] sm:$0xff] }
  0x1d   : > { %v563_v7 = vpack.c.bf16 %v245_v5, %v244_v4  ;;  %v247_v8 = vld [vmem:[%s238_s14 + $0x18] sm:$0xff]  ;;  %v252_v9 = vld [vmem:[%s243_s17] sm:$0xff]  ;;  %v253_v11 = vld [vmem:[%s243_s17 + $0x8] sm:$0xff]  ;;  %s536_s14 = sshll.u32 %s741_s4, 4  ;;  %s686_s4 = smov [#allocation3]  }
  0x1e   : > { %v567_v10 = vpack.c.bf16 %v247_v8, %v246_v6  ;;  %258 = vperm.xlu0 %615, %v252_v9   ;;  %v254_v12 = vld [vmem:[%s243_s17 + $0x10] sm:$0xff]  ;;  %v255_v14 = vld [vmem:[%s243_s17 + $0x18] sm:$0xff]  ;;  %s815_s19 = scalar_lea.hbm %s862_s5, %s536_s14  ;;  %s625_s27 = sshll.u32 %s686_s4, 4  ;;  %s626_s27 = int_to_ptr.vmem [resolvable:$false] %s625_s27 }
  0x1f   : > { %564 = vmatprep.subr.bf16.mxu0 %v563_v7  ;;  %571 = vmatprep.subr.bf16.mxu1 %v563_v7  ;;  %s627_s6 = scalar_lea.vmem %s626_s27, 32  ;;  %p628_p0 = scmp.lt.s32.totalorder %s817_s16, %s626_s27 }
  0x20   : > { %566 = vmatpush3.bf16.msra.mxu0 %v563_v7  ;;  %573 = vmatpush3.bf16.msra.mxu1 %v563_v7  ;;  %p629_p1 = scmp.lt.s32.totalorder %s627_s6, %s621_s26 }
  0x21   : > { %568 = vmatprep.subr.bf16.mxu0 %v567_v10  ;;  %572 = vmatprep.subr.bf16.mxu1 %v567_v10 }
  0x22   : > { %263 = vperm.xlu0 %615, %v253_v11   ;;  %268 = vperm.xlu1 %616, %v254_v12   ;;  %p630_p2 = por %p629_p1, %p628_p0 }
  0x24   : > { %570 = vmatpush3.bf16.msra.mxu0 %v567_v10  ;;  %574 = vmatpush3.bf16.msra.mxu1 %v567_v10  ;;  %p631_p3 = pnand %p630_p2, %p624_p13 }
  0x26   : > { %384 = vperm.xlu0 %615, %v378_v13   ;;  %273 = vperm.xlu1 %616, %v255_v14  }
  0x27   : > { %558 = vmatmul.mubr.msk.f32.vlgmr.msra.gmra.mrb[0].mxu0 %vm276_vm0, %v249_v15  ;;  %561 = vmatmul.mubr.msk.f32.vlgmr.msra.gmra.mrb[0].mxu1 %vm276_vm0, %v251_v16 }
  0x2a   : > { %394 = vperm.xlu0 %615, %v380_v17   ;;  %389 = vperm.xlu1 %616, %v379_v18  }
  0x2e   : > { %423 = vperm.xlu0 %615, %v420_v19   ;;  %399 = vperm.xlu1 %616, %v381_v20  }
  0x9d   : > { %v259_v21 = vpop.permute.xlu0 %258 }
  0xa1   : > { %v269_v22 = vpop.permute.xlu1 %268  ;;  %v264_v23 = vpop.permute.xlu0 %263 }
  0xa5   : > { %v274_v24 = vpop.permute.xlu1 %273  ;;  %v385_v25 = vpop.permute.xlu0 %384 }
  0xa9   : > { %v390_v26 = vpop.permute.xlu1 %389  ;;  %v395_v39 = vpop.permute.xlu0 %394 }
  0xad   : > { %v400_v43 = vpop.permute.xlu1 %399  ;;  %v424_v59 = vpop.permute.xlu0 %423 }
  0xae   : > { %v429_v61 = vrot.slane %v424_v59, %v428_v57 }
  0xfa   : > { %v559_v27 = vpop.f32.mrb[0].mxu0  ;;  %v562_v28 = vpop.f32.mrb[0].mxu1 }
  0xfb   : > { %v361_v29 = vadd.f32 %v559_v27, %v264_v23  ;;  %v371_v30 = vadd.f32 %v562_v28, %v274_v24  ;;  %v355_v31 = vpop.f32.mrb[1].mxu0  ;;  %v365_v32 = vpop.f32.mrb[1].mxu1 }
  0xfc   : > { %v356_v33 = vadd.f32 %v355_v31, %v259_v21  ;;  %v366_v34 = vadd.f32 %v365_v32, %v269_v22 }
  0xfd   : > { %v375_v35 = vmax.f32 %v361_v29, 0.0  ;;  %v377_v36 = vmax.f32 %v371_v30, 0.0 }
  0xfe   : > { %v374_v37 = vmax.f32 %v356_v33, 0.0  ;;  %v376_v38 = vmax.f32 %v366_v34, 0.0 }
  0xff   : > { %v403_v40 = vmul.f32 %v390_v26, %v375_v35  ;;  %v405_v45 = vmul.f32 %v400_v43, %v377_v36 }
 0x100   : > { %v402_v41 = vmul.f32 %v385_v25, %v374_v37  ;;  %v404_v42 = vmul.f32 %v395_v39, %v376_v38 }
 0x101   : > { %v408_v44 = vsel %vm406_vm1, %v403_v40, 0.0  ;;  %v412_v50 = vsel %vm406_vm1, %v405_v45, 0.0 }
 0x102   : > { %v407_v46 = vsel %vm406_vm1, %v402_v41, 0.0  ;;  %v410_v48 = vsel %vm406_vm1, %v404_v42, 0.0 }
 0x103   : > { %v409_v47 = vadd.f32 %v408_v44, %v407_v46 }
 0x105   : > { %v411_v49 = vadd.f32 %v410_v48, %v409_v47 }
 0x107   : > { %v413_v52 = vadd.f32 %v412_v50, %v411_v49 }
 0x109   : > { %v414_v53 = vrot.slane %v413_v52, 4 }
 0x10b   : > { %v415_v55 = vadd.f32 %v414_v53, %v413_v52 }
 0x10d   : > { %v416_v56 = vrot.slane %v415_v55, 2 }
 0x10f   : > { %v417_v58 = vadd.f32 %v416_v56, %v415_v55 }
 0x111   : > { %v418_v60 = vrot.slane %v417_v58, 1 }
 0x113   : > { %v419_v62 = vadd.f32 %v418_v60, %v417_v58 }
 0x115   : > { %v430_v63 = vadd.f32 %v429_v61, %v419_v62 }
 0x117   : > { %v431_v0 = vsel %vm406_vm1, %v430_v63, -inf }
 0x118   : > { %432 = vmax.xlane.f32.xlu1 %v431_v0 }
 0x1a5   : > { %v433_v1 = vpop.xlane.xlu1 %432 }
 0x1a6   : > { %v434_v2 = vsub.f32 %v430_v63, %v433_v1 }
 0x1a8   : > { %v435_v3 = vmul.f32 1.442695, %v434_v2 }
 0x1aa   : > { %617 = vpow2.f32 %v435_v3 }
 0x1b4   : > { %v618_v4 = vpop.eup %617 }
 0x1b5   : > { %v437_v5 = vsel %vm406_vm1, %v618_v4, 0.0 }
 0x1b6   : > { %438 = vadd.xlane.f32.xlu0 %v437_v5 }
 0x243   : > { %v439_v6 = vpop.xlane.xlu0 %438 }
 0x244   : > { %619 = vrcp.f32 %v439_v6 }
 0x24e   : > { %v620_v7 = vpop.eup %619 }
 0x24f   : > { %v441_v8 = vmul.f32 %v620_v7, %v618_v4 }
 0x251   : > { %443 = vst.msk [vmem:[%s233_s15] sm:$0x1] %vm442_vm2, %v441_v8 }
 0x252   : > { %634 = shalt.err (!%p631_p3)
}
 0x253   : > { %s635_s7 = scalar_lea.hbm %s815_s19, 16  ;;  %s639_s10 = scalar_lea.hbm %s862_s5, 48 }
 0x254   : > { %p636_p4 = scmp.ne.s32.totalorder %s815_s19, %s635_s7  ;;  %p640_p9 = scmp.lt.u32.totalorder %s815_s19, %s862_s5 }
 0x255   : > { %p641_p10 = scmp.lt.u32.totalorder %s639_s10, %s635_s7  ;;  %p643_p12 = scmp.lt.u32.totalorder %s635_s7, %s815_s19 }
 0x256   : > { %p637_p7 = pnand %p636_p4, %p758_p5 }
 0x257   : > { %p642_p11 = por %p641_p10, %p640_p9 }
 0x258   : > { %p638_p8 = pneg %p637_p7 }
 0x259   : > { %p644_p13 = por %p643_p12, %p642_p11 }
 0x25b   : > { %p645_p0 = pnand %p644_p13, %p638_p8 }
 0x25d   : > { %648 = shalt.err (!%p645_p0)
}
 0x25e   : > { %575 = dma.vmem_to_hbm [thread:$0]  (%p758_p5), %s817_s16, 16, %s815_s19, %s445_s24  }
 0x25f PF: > { %p581_p1 = scmp.ge.s32.totalorder %s683_s23, 2  ;;  %s469_s13 = sand.u32 1, %s671_s20  }
 0x260   : > { %s470_s14 = scalar_lea.sflag [#allocation4], %s469_s13 }
 0x261   : > { %p578_p2 = pnand %p581_p1, %p762_p6 }
 0x263   : > { %666 = dma.done.wait (!%p578_p2), %s470_s14, 16  }
 0x264   : > { %668 = vsyncadd (!%p578_p2), %s470_s14, 4294967280  ;;  %p17_p3 = scmp.ge.s32.totalorder %s745_s25, 5   ;;  %s865_s20 = smov %s675_s21 }
 0x265   : > { %s866_s21 = smov %s679_s22  ;;  %s867_s22 = smov %s756_s28 }
 0x266   : > { %s868_s23 = smov %s745_s25  ;;  %19 = sbr.rel (!%p17_p3) target bundleno = 6 (0x6), region = 78 }
 0x26d   :  { %474 = vsyncpa [#allocation4], 1 }
 0x26e   :  { %476 = vsyncpa [#allocation4 + $0x1], 1 }

</bundles_post_ra>
